<compile_context>
chip_gen: v7x
topology: tpu7x:2x2x1
jax: 0.10.0
libtpu: 0.0.40
codegen_flags: <defaults>
</compile_context>

<pallas_src>
import functools

import jax
import jax.numpy as jnp
import numpy as np
from jax.experimental import pallas as pl
from jax.experimental.pallas import tpu as pltpu

_EPS = 1e-5
_PARALLEL = pltpu.CompilerParams(dimension_semantics=("parallel",))


# ----------------------------- Pallas kernels -------------------------------

def _gn_normalize(y, s, st, gamma, beta, *, eps, inv_count, g_count):
    """GroupNorm of one sample. y: (M, C) f32 conv output; channels grouped contiguously."""
    if g_count == 1:
        ones_c = jnp.ones((1, y.shape[1]), jnp.float32)
        tot = jnp.sum(jnp.sum(y, axis=0, keepdims=True), axis=1, keepdims=True)    # (1, 1)
        mean_c = (tot * inv_count) * ones_c                                         # (1, C)
        cen = y - mean_c
        var = jnp.sum(jnp.sum(cen * cen, axis=0, keepdims=True),
                      axis=1, keepdims=True) * inv_count                            # (1, 1)
        inv_c = jax.lax.rsqrt(var + eps) * ones_c                                   # (1, C)
    else:
        csum = jnp.sum(y, axis=0, keepdims=True)                                    # (1, C)
        mean_c = jnp.dot(jnp.dot(csum, s) * inv_count, st)                          # (1, C)
        cen = y - mean_c
        gvar = jnp.dot(jnp.sum(cen * cen, axis=0, keepdims=True), s) * inv_count    # (1, G)
        inv_c = jnp.dot(jax.lax.rsqrt(gvar + eps), st)                              # (1, C)
    return cen * (inv_c * gamma) + beta


def _conv_gn_kernel(p_ref, w_ref, s_ref, st_ref, g_ref, b_ref, o_ref, *,
                    eps, relu, inv_count, g_count):
    # One sample per grid step: (M, K)bf16 @ (K, C)bf16 -> f32 on the MXU, GN epilogue in f32.
    y = jnp.dot(p_ref[0], w_ref[...], preferred_element_type=jnp.float32)           # (M, C)
    out = _gn_normalize(y, s_ref[...], st_ref[...], g_ref[...], b_ref[...],
                        eps=eps, inv_count=inv_count, g_count=g_count)
    if relu:
        out = jnp.maximum(out, 0.0)
    o_ref[0] = out


def _conv_gn_res_kernel(p_ref, w_ref, s_ref, st_ref, g_ref, b_ref, r_ref, o_ref, *,
                        eps, inv_count, g_count):
    y = jnp.dot(p_ref[0], w_ref[...], preferred_element_type=jnp.float32)
    out = _gn_normalize(y, s_ref[...], st_ref[...], g_ref[...], b_ref[...],
                        eps=eps, inv_count=inv_count, g_count=g_count)
    o_ref[0] = jnp.maximum(out + r_ref[0], 0.0)      # bottleneck: relu(GN(conv3) + identity)


def _avg4_kernel(a_ref, b_ref, c_ref, d_ref, o_ref):
    o_ref[...] = (a_ref[...] + b_ref[...] + c_ref[...] + d_ref[...]) * 0.25


def _max9_kernel(r0, r1, r2, r3, r4, r5, r6, r7, r8, o_ref):
    m = r0[...]
    for r in (r1, r2, r3, r4, r5, r6, r7, r8):
        m = jnp.maximum(m, r[...])
    o_ref[...] = m


def _linear_relu_kernel(x_ref, w_ref, b_ref, o_ref):
    y = jnp.dot(x_ref[...], w_ref[...], preferred_element_type=jnp.float32)
    o_ref[...] = jnp.maximum(y + b_ref[...], 0.0)


# ----------------------------- Pallas-backed ops ----------------------------

def _im2col_nhwc(x, kh, kw, stride, padding):
    """Channels-last im2col; K is tap-major / channel-minor: k = (i*kw + j)*C + c."""
    n, h, w, c = x.shape
    oh = (h + 2 * padding - kh) // stride + 1
    ow = (w + 2 * padding - kw) // stride + 1
    xp = jnp.pad(x, ((0, 0), (padding, padding), (padding, padding), (0, 0)))
    cols = []
    for i in range(kh):
        for j in range(kw):
            cols.append(xp[:, i:i + stride * (oh - 1) + 1:stride,
                              j:j + stride * (ow - 1) + 1:stride, :])
    patches = jnp.concatenate(cols, axis=-1)                  # (N, OH, OW, KH*KW*C)
    return patches.reshape(n, oh * ow, kh * kw * c), oh, ow


def conv_gn_pallas(x, cp, *, kh, kw, stride, padding, ngroups, relu=True, residual=None):
    """Fused Conv2d(bias=False) + GroupNorm (+ residual add) + ReLU.

    x:        (N, H, W, Cin) f32 NHWC activation.
    cp:       dict from make_conv_params ({'w','g','b','s','st'}).
    residual: optional (N, OH, OW, Cout) f32 added before the final ReLU.
    Returns   (N, OH, OW, Cout) f32.
    """
    n = x.shape[0]
    if kh == 1 and kw == 1:
        if stride != 1:
            x = x[:, ::stride, ::stride, :]
        oh, ow = x.shape[1], x.shape[2]
        patches = x.reshape(n, oh * ow, x.shape[3])           # 1x1 conv: no im2col at all
    else:
        patches, oh, ow = _im2col_nhwc(x, kh, kw, stride, padding)
    k_w, cout = cp['w'].shape
    if k_w > patches.shape[-1]:                               # zero-pad ragged K (stem: 49 -> 64)
        patches = jnp.pad(patches, ((0, 0), (0, 0), (0, k_w - patches.shape[-1])))
    patches = patches.astype(jnp.bfloat16)                    # bf16 MXU operands, f32 accum
    m = oh * ow
    inv_count = 1.0 / float(m * (cout // ngroups))

    inputs = [patches, cp['w'], cp['s'], cp['st'], cp['g'], cp['b']]
    in_specs = [
        pl.BlockSpec((1, m, k_w), lambda i: (i, 0, 0)),       # per-sample patch block
        pl.BlockSpec((k_w, cout), lambda i: (0, 0)),          # weights stay resident
        pl.BlockSpec((cout, ngroups), lambda i: (0, 0)),      # group indicator S
        pl.BlockSpec((ngroups, cout), lambda i: (0, 0)),      # S^T
        pl.BlockSpec((1, cout), lambda i: (0, 0)),            # gamma
        pl.BlockSpec((1, cout), lambda i: (0, 0)),            # beta
    ]
    if residual is None:
        kern = functools.partial(_conv_gn_kernel, eps=_EPS, relu=relu,
                                 inv_count=inv_count, g_count=ngroups)
    else:
        inputs.append(residual.reshape(n, m, cout))
        in_specs.append(pl.BlockSpec((1, m, cout), lambda i: (i, 0, 0)))
        kern = functools.partial(_conv_gn_res_kernel, eps=_EPS,
                                 inv_count=inv_count, g_count=ngroups)

    out = pl.pallas_call(
        kern,
        out_shape=jax.ShapeDtypeStruct((n, m, cout), jnp.float32),
        grid=(n,),
        in_specs=in_specs,
        out_specs=pl.BlockSpec((1, m, cout), lambda i: (i, 0, 0)),
        compiler_params=_PARALLEL,                            # v7x: 2 TCs over the batch
    )(*inputs)
    return out.reshape(n, oh, ow, cout)


def avg_pool2_pallas(x):
    # F.avg_pool2d(x, 2) on NHWC input: 4 shifted views averaged on the VPU.
    n, h, w, c = x.shape
    oh, ow = h // 2, w // 2
    flat = (n, oh * ow * c)
    parts = [x[:, di::2, dj::2, :].reshape(flat) for di in (0, 1) for dj in (0, 1)]
    y = pl.pallas_call(_avg4_kernel,
                       out_shape=jax.ShapeDtypeStruct(flat, jnp.float32))(*parts)
    return y.reshape(n, oh, ow, c)


def max_pool3x3_s2_pallas(x):
    # nn.MaxPool2d(kernel_size=3, stride=2, padding=1): 9 shifted views, VPU max tree.
    n, h, w, c = x.shape
    oh = (h + 2 - 3) // 2 + 1
    ow = (w + 2 - 3) // 2 + 1
    xp = jnp.pad(x, ((0, 0), (1, 1), (1, 1), (0, 0)), constant_values=-jnp.inf)
    flat = (n, oh * ow * c)
    parts = [xp[:, i:i + 2 * (oh - 1) + 1:2, j:j + 2 * (ow - 1) + 1:2, :].reshape(flat)
             for i in range(3) for j in range(3)]
    y = pl.pallas_call(_max9_kernel,
                       out_shape=jax.ShapeDtypeStruct(flat, jnp.float32))(*parts)
    return y.reshape(n, oh, ow, c)


def linear_relu_pallas(x, w, b):
    m, n = x.shape[0], w.shape[1]
    return pl.pallas_call(_linear_relu_kernel,
                          out_shape=jax.ShapeDtypeStruct((m, n), jnp.float32),
                          )(x.astype(jnp.bfloat16), w, b)


# --------------------------- parameters (deterministic init) ----------------

def _kaiming_oihw(key, cout, cin, kh, kw):
    std = (2.0 / (cin * kh * kw)) ** 0.5
    return std * jax.random.normal(key, (cout, cin, kh, kw), jnp.float32)


def make_conv_params(w_oihw, ngroups, gamma=None, beta=None, k_pad_to=None):
    """PyTorch OIHW conv weight + GN affine -> fused-kernel parameter dict."""
    cout, cin, kh, kw = w_oihw.shape
    k = cin * kh * kw
    wm = jnp.transpose(w_oihw, (2, 3, 1, 0)).reshape(k, cout)   # rows: tap-major, channel-minor
    if k_pad_to is not None and k_pad_to > k:
        wm = jnp.pad(wm, ((0, k_pad_to - k), (0, 0)))
    if gamma is None:
        gamma = jnp.ones((cout,), jnp.float32)
    if beta is None:
        beta = jnp.zeros((cout,), jnp.float32)
    cg = cout // ngroups
    s = (jnp.arange(cout)[:, None] // cg == jnp.arange(ngroups)[None, :]).astype(jnp.float32)
    return {'w': wm.astype(jnp.bfloat16),
            'g': gamma.reshape(1, cout).astype(jnp.float32),
            'b': beta.reshape(1, cout).astype(jnp.float32),
            's': s, 'st': jnp.transpose(s)}


def build_params(key, *, in_channels, base_planes, ngroups, spatial_size, output_size):
    layers_cfg = (3, 4, 6, 3)          # resnet50 (Bottleneck blocks)
    expansion = 4
    keys = iter(jax.random.split(key, 128))
    p = {}
    # backbone.conv1: Conv2d(in, base_planes, 7, stride=2, pad=3) + GroupNorm(ngroups) + ReLU
    p['conv1'] = make_conv_params(_kaiming_oihw(next(keys), base_planes, in_channels, 7, 7),
                                  ngroups, k_pad_to=64)
    inplanes = base_planes
    layers = []
    for li, nblocks in enumerate(layers_cfg):
        planes = base_planes * (2 ** li)
        layer_stride = 1 if li == 0 else 2
        blocks = []
        for bi in range(nblocks):
            stride = layer_stride if bi == 0 else 1
            bp = {
                'c1': make_conv_params(_kaiming_oihw(next(keys), planes, inplanes, 1, 1), ngroups),
                'c2': make_conv_params(_kaiming_oihw(next(keys), planes, planes, 3, 3), ngroups),
                'c3': make_conv_params(_kaiming_oihw(next(keys), planes * expansion, planes, 1, 1),
                                       ngroups),
            }
            if stride != 1 or inplanes != planes * expansion:    # downsample branch
                bp['ds'] = make_conv_params(
                    _kaiming_oihw(next(keys), planes * expansion, inplanes, 1, 1), ngroups)
            inplanes = planes * expansion
            blocks.append(bp)
        layers.append(blocks)
    p['layers'] = layers
    final_channels = inplanes
    final_spatial = int(spatial_size * (1.0 / 2 ** 5))           # final_spatial_compress
    num_comp = int(round(2048 / final_spatial ** 2))
    # compression: Conv2d(final_channels, num_comp, 3, pad=1) + GroupNorm(1) + ReLU
    p['comp'] = make_conv_params(_kaiming_oihw(next(keys), num_comp, final_channels, 3, 3), 1)
    # visual_fc: Flatten + Linear(num_comp*final_spatial^2, output_size) + ReLU
    flat = num_comp * final_spatial * final_spatial
    p['fc_w'] = ((1.0 / flat ** 0.5) *
                 jax.random.normal(next(keys), (flat, output_size), jnp.float32)
                 ).astype(jnp.bfloat16)
    p['fc_b'] = jnp.zeros((1, output_size), jnp.float32)
    return p


# --------------------------- forward pass -----------------------------------

def vln_depth_encoder_forward(params, depth, *, ngroups):
    # depth == observations['depth']: (B, H, W, 1) float32 (no /255 for depth)
    x = depth.astype(jnp.float32)
    x = avg_pool2_pallas(x)                                      # F.avg_pool2d(x, 2)
    # running_mean_and_var is nn.Sequential() (normalize_visual_inputs=False) -> identity
    x = conv_gn_pallas(x, params['conv1'], kh=7, kw=7, stride=2, padding=3,
                       ngroups=ngroups, relu=True)               # stem conv + GN + ReLU (fused)
    x = max_pool3x3_s2_pallas(x)                                 # MaxPool2d(3, 2, 1)
    for li, blocks in enumerate(params['layers']):
        layer_stride = 1 if li == 0 else 2
        for bi, bp in enumerate(blocks):
            stride = layer_stride if bi == 0 else 1
            if 'ds' in bp:                                       # downsample branch: conv + GN
                identity = conv_gn_pallas(x, bp['ds'], kh=1, kw=1, stride=stride,
                                          padding=0, ngroups=ngroups, relu=False)
            else:
                identity = x
            out = conv_gn_pallas(x, bp['c1'], kh=1, kw=1, stride=1, padding=0,
                                 ngroups=ngroups, relu=True)
            out = conv_gn_pallas(out, bp['c2'], kh=3, kw=3, stride=stride, padding=1,
                                 ngroups=ngroups, relu=True)
            x = conv_gn_pallas(out, bp['c3'], kh=1, kw=1, stride=1, padding=0,
                               ngroups=ngroups, residual=identity)   # GN + add + ReLU fused
    x = conv_gn_pallas(x, params['comp'], kh=3, kw=3, stride=1, padding=1,
                       ngroups=1, relu=True)                     # compression conv + GN(1) + ReLU
    n, h, w, c = x.shape
    flat = jnp.transpose(x, (0, 3, 1, 2)).reshape(n, c * h * w)  # nn.Flatten in NCHW order
    return linear_relu_pallas(flat, params['fc_w'], params['fc_b'])  # Linear + ReLU


# --------------------------- plain-JAX references (unit checks only) --------

def conv_gn_ref(x_nhwc, w_oihw, stride, padding, gamma, beta, ngroups, relu,
                residual_nhwc=None, eps=1e-5):
    x = jnp.transpose(x_nhwc, (0, 3, 1, 2))
    y = jax.lax.conv_general_dilated(
        x, w_oihw, (stride, stride), [(padding, padding)] * 2,
        dimension_numbers=('NCHW', 'OIHW', 'NCHW'))
    n, c, h, w = y.shape
    yr = y.reshape(n, ngroups, -1)
    m = yr.mean(-1, keepdims=True)
    v = jnp.square(yr - m).mean(-1, keepdims=True)
    yn = ((yr - m) * jax.lax.rsqrt(v + eps)).reshape(n, c, h, w)
    yn = yn * gamma.reshape(1, c, 1, 1) + beta.reshape(1, c, 1, 1)
    yn = jnp.transpose(yn, (0, 2, 3, 1))
    if residual_nhwc is not None:
        yn = yn + residual_nhwc
        relu = True
    return jnp.maximum(yn, 0.0) if relu else yn


if __name__ == "__main__":
    key = jax.random.PRNGKey(0)
    k_par, k_depth, k_x, k_w, k_g, k_b, k_r, k_w2 = jax.random.split(key, 8)

    # ---- unit check 1: fused 3x3/s2 conv + GroupNorm + ReLU vs plain-JAX reference ----
    N, H, W, CIN, COUT, G = 2, 16, 16, 8, 16, 4
    x = jax.random.normal(k_x, (N, H, W, CIN), jnp.float32)
    w = 0.2 * jax.random.normal(k_w, (COUT, CIN, 3, 3), jnp.float32)
    gamma = jax.random.uniform(k_g, (COUT,), jnp.float32, 0.5, 1.5)
    beta = jax.random.uniform(k_b, (COUT,), jnp.float32, -0.2, 0.2)
    cp = make_conv_params(w, G, gamma, beta)
    got = conv_gn_pallas(x, cp, kh=3, kw=3, stride=2, padding=1, ngroups=G, relu=True)
    want = conv_gn_ref(x, w, 2, 1, gamma, beta, G, True)
    np.testing.assert_allclose(np.asarray(got), np.asarray(want), rtol=5e-2, atol=5e-2)

    # ---- unit check 2: fused 1x1 conv + GroupNorm + residual add + ReLU ----
    w2 = 0.2 * jax.random.normal(k_w2, (COUT, CIN, 1, 1), jnp.float32)
    res = jax.random.normal(k_r, (N, H, W, COUT), jnp.float32)
    cp2 = make_conv_params(w2, G, gamma, beta)
    got2 = conv_gn_pallas(x, cp2, kh=1, kw=1, stride=1, padding=0, ngroups=G,
                          relu=False, residual=res)
    want2 = conv_gn_ref(x, w2, 1, 0, gamma, beta, G, False, residual_nhwc=res)
    np.testing.assert_allclose(np.asarray(got2), np.asarray(want2), rtol=5e-2, atol=5e-2)

    # ---- VlnResnetDepthEncoder forward: depth obs (2, 128, 128, 1), resnet50, baseplanes=16 ----
    B, HH, WW = 2, 128, 128
    NGROUPS = 16 // 2
    params = build_params(k_par, in_channels=1, base_planes=16, ngroups=NGROUPS,
                          spatial_size=HH // 2, output_size=128)
    depth = jax.random.uniform(k_depth, (B, HH, WW, 1), jnp.float32)

    fwd = jax.jit(functools.partial(vln_depth_encoder_forward, ngroups=NGROUPS))
    out = jax.block_until_ready(fwd(params, depth))

    assert out.shape == (B, 128), out.shape
    assert bool(jnp.all(jnp.isfinite(out)))
    assert bool(jnp.any(out > 0.0))   # post-ReLU output
    print("KERNEL_OK")
</pallas_src>

<mosaic_0001>
module attributes {stable_mosaic.version = 11 : i64} {
  func.func @_conv_gn_kernel(%arg0: i32, %arg1: memref<1x64x72xbf16, #tpu.memory_space<vmem>>, %arg2: memref<72x16xbf16, #tpu.memory_space<vmem>>, %arg3: memref<16x4xf32, #tpu.memory_space<vmem>>, %arg4: memref<4x16xf32, #tpu.memory_space<vmem>>, %arg5: memref<1x16xf32, #tpu.memory_space<vmem>>, %arg6: memref<1x16xf32, #tpu.memory_space<vmem>>, %arg7: memref<1x64x16xf32, #tpu.memory_space<vmem>>) attributes {dimension_semantics = [#tpu.dimension_semantics<parallel>], iteration_bounds = array<i64: 2>, scalar_prefetch = 0 : i64, scratch_operands = 0 : i64, tpu.core_type = #tpu.core_type<tc>, window_params = [{transform_indices = @transform_0, window_bounds = array<i64: 1, 64, 72>}, {pipeline_mode = #tpu.pipeline_mode<synchronous>, transform_indices = @transform_1, window_bounds = array<i64: 72, 16>}, {pipeline_mode = #tpu.pipeline_mode<synchronous>, transform_indices = @transform_2, window_bounds = array<i64: 16, 4>}, {pipeline_mode = #tpu.pipeline_mode<synchronous>, transform_indices = @transform_3, window_bounds = array<i64: 4, 16>}, {pipeline_mode = #tpu.pipeline_mode<synchronous>, transform_indices = @transform_4, window_bounds = array<i64: 1, 16>}, {pipeline_mode = #tpu.pipeline_mode<synchronous>, transform_indices = @transform_5, window_bounds = array<i64: 1, 16>}, {transform_indices = @transform_6, window_bounds = array<i64: 1, 64, 16>}]} {
    %c0 = arith.constant 0 : index
    %c0_0 = arith.constant 0 : index
    %c0_1 = arith.constant 0 : index
    %0 = vector.load %arg1[%c0, %c0_0, %c0_1] : memref<1x64x72xbf16, #tpu.memory_space<vmem>>, vector<1x64x72xbf16>
    %1 = vector.shape_cast %0 : vector<1x64x72xbf16> to vector<64x72xbf16>
    %c0_2 = arith.constant 0 : index
    %c0_3 = arith.constant 0 : index
    %2 = vector.load %arg2[%c0_2, %c0_3] : memref<72x16xbf16, #tpu.memory_space<vmem>>, vector<72x16xbf16>
    %cst = arith.constant dense<0.000000e+00> : vector<64x16xf32>
    %3 = tpu.matmul %1, %2, %cst {dimension_numbers = #tpu.dot_dimension_numbers<[1], [0], [0], [1], [0, 0, 1, 1], [], []>} : vector<64x72xbf16>, vector<72x16xbf16>, vector<64x16xf32> -> vector<64x16xf32>
    %c0_4 = arith.constant 0 : index
    %c0_5 = arith.constant 0 : index
    %4 = vector.load %arg3[%c0_4, %c0_5] : memref<16x4xf32, #tpu.memory_space<vmem>>, vector<16x4xf32>
    %c0_6 = arith.constant 0 : index
    %c0_7 = arith.constant 0 : index
    %5 = vector.load %arg4[%c0_6, %c0_7] : memref<4x16xf32, #tpu.memory_space<vmem>>, vector<4x16xf32>
    %c0_8 = arith.constant 0 : index
    %c0_9 = arith.constant 0 : index
    %6 = vector.load %arg5[%c0_8, %c0_9] : memref<1x16xf32, #tpu.memory_space<vmem>>, vector<1x16xf32>
    %c0_10 = arith.constant 0 : index
    %c0_11 = arith.constant 0 : index
    %7 = vector.load %arg6[%c0_10, %c0_11] : memref<1x16xf32, #tpu.memory_space<vmem>>, vector<1x16xf32>
    %cst_12 = arith.constant dense<0.000000e+00> : vector<16xf32>
    %8 = vector.multi_reduction <add>, %3, %cst_12 [0] : vector<64x16xf32> to vector<16xf32>
    %9 = vector.shape_cast %8 : vector<16xf32> to vector<1x16xf32>
    %cst_13 = arith.constant dense<0.000000e+00> : vector<1x4xf32>
    %10 = tpu.matmul %9, %4, %cst_13 {dimension_numbers = #tpu.dot_dimension_numbers<[1], [0], [0], [1], [0, 0, 1, 1], [], []>} : vector<1x16xf32>, vector<16x4xf32>, vector<1x4xf32> -> vector<1x4xf32>
    %cst_14 = arith.constant 3.906250e-03 : f32
    %11 = vector.broadcast %cst_14 : f32 to vector<1x4xf32>
    %12 = arith.mulf %10, %11 : vector<1x4xf32>
    %cst_15 = arith.constant dense<0.000000e+00> : vector<1x16xf32>
    %13 = tpu.matmul %12, %5, %cst_15 {dimension_numbers = #tpu.dot_dimension_numbers<[1], [0], [0], [1], [0, 0, 1, 1], [], []>} : vector<1x4xf32>, vector<4x16xf32>, vector<1x16xf32> -> vector<1x16xf32>
    %14 = vector.broadcast %13 : vector<1x16xf32> to vector<64x16xf32>
    %15 = arith.subf %3, %14 : vector<64x16xf32>
    %16 = arith.mulf %15, %15 : vector<64x16xf32>
    %cst_16 = arith.constant dense<0.000000e+00> : vector<16xf32>
    %17 = vector.multi_reduction <add>, %16, %cst_16 [0] : vector<64x16xf32> to vector<16xf32>
    %18 = vector.shape_cast %17 : vector<16xf32> to vector<1x16xf32>
    %cst_17 = arith.constant dense<0.000000e+00> : vector<1x4xf32>
    %19 = tpu.matmul %18, %4, %cst_17 {dimension_numbers = #tpu.dot_dimension_numbers<[1], [0], [0], [1], [0, 0, 1, 1], [], []>} : vector<1x16xf32>, vector<16x4xf32>, vector<1x4xf32> -> vector<1x4xf32>
    %cst_18 = arith.constant 3.906250e-03 : f32
    %20 = vector.broadcast %cst_18 : f32 to vector<1x4xf32>
    %21 = arith.mulf %19, %20 : vector<1x4xf32>
    %cst_19 = arith.constant 9.99999974E-6 : f32
    %22 = vector.broadcast %cst_19 : f32 to vector<1x4xf32>
    %23 = arith.addf %21, %22 : vector<1x4xf32>
    %24 = math.rsqrt %23 : vector<1x4xf32>
    %cst_20 = arith.constant dense<0.000000e+00> : vector<1x16xf32>
    %25 = tpu.matmul %24, %5, %cst_20 {dimension_numbers = #tpu.dot_dimension_numbers<[1], [0], [0], [1], [0, 0, 1, 1], [], []>} : vector<1x4xf32>, vector<4x16xf32>, vector<1x16xf32> -> vector<1x16xf32>
    %26 = arith.mulf %25, %6 : vector<1x16xf32>
    %27 = vector.broadcast %26 : vector<1x16xf32> to vector<64x16xf32>
    %28 = arith.mulf %15, %27 : vector<64x16xf32>
    %29 = vector.broadcast %7 : vector<1x16xf32> to vector<64x16xf32>
    %30 = arith.addf %28, %29 : vector<64x16xf32>
    %cst_21 = arith.constant 0.000000e+00 : f32
    %31 = vector.broadcast %cst_21 : f32 to vector<64x16xf32>
    %32 = arith.maximumf %30, %31 : vector<64x16xf32>
    %c0_22 = arith.constant 0 : index
    %c0_23 = arith.constant 0 : index
    %c0_24 = arith.constant 0 : index
    %33 = vector.load %arg7[%c0_22, %c0_23, %c0_24] : memref<1x64x16xf32, #tpu.memory_space<vmem>>, vector<1x64x16xf32>
    %34 = vector.shape_cast %33 : vector<1x64x16xf32> to vector<64x16xf32>
    %35 = vector.shape_cast %32 : vector<64x16xf32> to vector<1x64x16xf32>
    tpu.vector_store %arg7[%c0_22, %c0_23, %c0_24], %35 {strides = array<i32>} : memref<1x64x16xf32, #tpu.memory_space<vmem>>, vector<1x64x16xf32>,
    return
  }
  func.func @transform_0(%arg0: i32) -> (i32, i32, i32) {
    %c0_i32 = arith.constant 0 : i32
    %c0_i32_0 = arith.constant 0 : i32
    %c0_i32_1 = arith.constant 0 : i32
    return %arg0, %c0_i32, %c0_i32_0 : i32, i32, i32
  }
  func.func @transform_1(%arg0: i32) -> (i32, i32) {
    %c0_i32 = arith.constant 0 : i32
    %c0_i32_0 = arith.constant 0 : i32
    %c0_i32_1 = arith.constant 0 : i32
    return %c0_i32, %c0_i32_0 : i32, i32
  }
  func.func @transform_2(%arg0: i32) -> (i32, i32) {
    %c0_i32 = arith.constant 0 : i32
    %c0_i32_0 = arith.constant 0 : i32
    %c0_i32_1 = arith.constant 0 : i32
    return %c0_i32, %c0_i32_0 : i32, i32
  }
  func.func @transform_3(%arg0: i32) -> (i32, i32) {
    %c0_i32 = arith.constant 0 : i32
    %c0_i32_0 = arith.constant 0 : i32
    %c0_i32_1 = arith.constant 0 : i32
    return %c0_i32, %c0_i32_0 : i32, i32
  }
  func.func @transform_4(%arg0: i32) -> (i32, i32) {
    %c0_i32 = arith.constant 0 : i32
    %c0_i32_0 = arith.constant 0 : i32
    %c0_i32_1 = arith.constant 0 : i32
    return %c0_i32, %c0_i32_0 : i32, i32
  }
  func.func @transform_5(%arg0: i32) -> (i32, i32) {
    %c0_i32 = arith.constant 0 : i32
    %c0_i32_0 = arith.constant 0 : i32
    %c0_i32_1 = arith.constant 0 : i32
    return %c0_i32, %c0_i32_0 : i32, i32
  }
  func.func @transform_6(%arg0: i32) -> (i32, i32, i32) {
    %c0_i32 = arith.constant 0 : i32
    %c0_i32_0 = arith.constant 0 : i32
    %c0_i32_1 = arith.constant 0 : i32
    return %arg0, %c0_i32, %c0_i32_0 : i32, i32, i32
  }
}

</mosaic_0001>

<bundles_post_ra>
// kernel: tpu_custom_call.1
= control target key start
LH: loop header
LB: loop body
LE: loop exit
PB: predicated region body
PF: predicated region fallthrough
CT: control target
= control target key end

     0   :  { %11 = vsyncpa [#allocation3], 0  ;;  %s1345_s0 = inlined_call_operand.hbm [shape: bf16[2,64,72], index: 0, kind: input, shape index: {}]   ;;  %s1346_s1 = inlined_call_operand.vmem [shape: bf16[72,16], index: 1, kind: input, shape index: {}]   ;;  %s1347_s2 = inlined_call_operand.vmem [shape: f32[16,4], index: 2, kind: input, shape index: {}]   ;;  %s1348_s3 = inlined_call_operand.vmem [shape: f32[4,16], index: 3, kind: input, shape index: {}]   ;;  %s1349_s4 = inlined_call_operand.vmem [shape: f32[1,16], index: 4, kind: input, shape index: {}]   ;;  %s1350_s5 = inlined_call_operand.vmem [shape: f32[1,16], index: 5, kind: input, shape index: {}]   ;;  %s1351_s6 = inlined_call_operand.vmem [shape: f32[2,64,16], index: 6, kind: output, shape index: {}]  }
   0x1   :  { %13 = vsyncpa [#allocation3 + $0x1], 0  ;;  %s1161_s21 = smov 0   ;;  %s1163_s22 = smov 0  }
   0x2   :  { %s1165_s23 = smov 0   ;;  %s1167_s24 = smov 0  }
   0x3 LB: > { %s1180_s25 = sadd.s32 4294967295, %s1118_s24   ;;  %s1183_s26 = sadd.s32 1, %s1118_s24   ;;  %s1118_s24 = sphi %s1167_s24, %s1358_s24   ;;  %s1114_s23 = sphi %s1165_s23, %s1357_s23   ;;  %s1110_s22 = sphi %s1163_s22, %s1356_s22   ;;  %s1106_s21 = sphi %s1161_s21, %s1355_s21  }
   0x4   : > { %s23_s27 = ssub.s32 %s1118_s24, %s1183_s26  ;;  %s26_s28 = sadd.s32 1, %s1114_s23 }
   0x5   : > { %p24_p0 = scmp.eq.s32.totalorder %s23_s27, 0  ;;  %p33_p1 = scmp.ne.s32.totalorder %s1114_s23, %s1110_s22 }
   0x6   : > { %p34_p2 = scmp.eq.s32.totalorder %s1118_s24, 0  ;;  %p39_p3 = scmp.ne.s32.totalorder %s1110_s22, %s1106_s21 }
   0x7   : > { %s1193_s29 = scalar_select %p24_p0, %s1114_s23, %s26_s28  }
   0x8   : > { %p35_p4 = por %p34_p2, %p33_p1  ;;  %p40_p5 = scmp.eq.s32.totalorder %s1180_s25, 0 }
   0x9   : > { %p1005_p6 = scmp.lt.s32.totalorder %s1118_s24, 2  ;;  %s209_s7 = sand.u32 1, %s1114_s23  }
   0xa   : > { %p1197_p7 = por %p40_p5, %p39_p3  ;;  %s900_s8 = sshll.u32 %s209_s7, 5 }
   0xb   : > { %s929_s9 = sshll.u32 %s1118_s24, 9  ;;  %s213_s13 = scalar_lea.vmem [#allocation2], %s900_s8 }
   0xc   : > { %s1206_s12 = scalar_lea.hbm %s1345_s0, %s929_s9  ;;  %s220_s14 = sshll.u32 %s213_s13, 4  ;;  %s1208_s14 = int_to_ptr.vmem [resolvable:$true] %s220_s14 }
   0xd   : > { %p1210_p8 = pnand %p1005_p6, %p35_p4  ;;  %s1215_s16 = scalar_lea.sflag [#allocation3], %s209_s7 }
   0xe   : > { %s1054_s17 = scalar_lea.hbm %s1206_s12, 512  ;;  %s1059_s20 = scalar_lea.hbm %s1345_s0, 1024 }
   0xf   : > { %p1055_p10 = scmp.ne.s32.totalorder %s1206_s12, %s1054_s17  ;;  %p1056_p11 = pneg %p1210_p8 }
  0x10   : > { %p1060_p0 = scmp.lt.u32.totalorder %s1206_s12, %s1345_s0  ;;  %p1061_p1 = scmp.lt.u32.totalorder %s1059_s20, %s1054_s17 }
  0x11   : > { %p1057_p12 = pnand %p1056_p11, %p1055_p10  ;;  %p1063_p3 = scmp.lt.u32.totalorder %s1054_s17, %s1206_s12 }
  0x12   : > { %p1062_p2 = por %p1061_p1, %p1060_p0 }
  0x13   : > { %p1058_p13 = pneg %p1057_p12 }
  0x14   : > { %p1064_p4 = por %p1063_p3, %p1062_p2 }
  0x16   : > { %p1065_p5 = pnand %p1064_p4, %p1058_p13 }
  0x18   : > { %1068 = shalt.err (!%p1065_p5)
}
  0x19   : > { %s1069_s28 = scalar_lea.vmem %s1208_s14, 512  ;;  %s1120_s7 = smov [#allocation2]  }
  0x1a   : > { %p1070_p6 = scmp.ne.s32.totalorder %s1208_s14, %s1069_s28  ;;  %s1074_s8 = sshll.u32 %s1120_s7, 4  ;;  %s1075_s8 = int_to_ptr.vmem [resolvable:$false] %s1074_s8 }
  0x1b   : > { %s1076_s9 = scalar_lea.vmem %s1075_s8, 1024  ;;  %p1077_p9 = scmp.lt.s32.totalorder %s1208_s14, %s1075_s8 }
  0x1c   : > { %p1072_p10 = pnand %p1070_p6, %p1056_p11  ;;  %p1078_p0 = scmp.lt.s32.totalorder %s1076_s9, %s1069_s28 }
  0x1e   : > { %p1073_p12 = pneg %p1072_p10  ;;  %p1079_p1 = por %p1078_p0, %p1077_p9 }
  0x20   : > { %p1080_p2 = pnand %p1079_p1, %p1073_p12 }
  0x22   : > { %1083 = shalt.err (!%p1080_p2)
}
  0x23   : > { %s1121_s10 = smov 64   ;;  %s1122_s11 = smov 4  }
  0x24   : > { %1004 = dma.hbm_to_vmem [thread:$0]  (!%p1210_p8), %s1206_s12, 512, %s1208_s14, %s1215_s16, %s1121_s10, %s1121_s10, %s1122_s11  }
  0x25   : > { %p228_p11 = scmp.lt.s32.totalorder %s1118_s24, 3  ;;  %p1354_p13 = scmp.ge.s32.totalorder %s1118_s24, 1 }
  0x27   : > { %p229_p3 = pnand %p1354_p13, %p228_p11 }
  0x28   : > { %s234_s13 = sand.u32 (!%p229_p3), 1, %s1110_s22  }
  0x29   : > { %232 = sbr.rel (%p229_p3) target bundleno = 1224 (0x4c8), region = 44  ;;  %s904_s17 = sshll.u32 (!%p229_p3), %s234_s13, 5 }
  0x2a   : > { %s235_s18 = scalar_lea.sflag (!%p229_p3), [#allocation3], %s234_s13  ;;  %s238_s19 = scalar_lea.vmem (!%p229_p3), [#allocation2], %s904_s17 }
  0x30   : > { %1101 = dma.done.wait (%p1197_p7), %s235_s18, 512  }
  0x31   : > { %1103 = vsyncadd (%p1197_p7), %s235_s18, 4294966784  ;;  %v1043_v0 = vld [vmem:[%s1346_s1] sm:$0xff]   ;;  %v1044_v1 = vld [vmem:[%s1346_s1 + $0x8] sm:$0xff]   ;;  %vm337_vm0 = vcmask 588800   ;;  %vm350_vm1 = vcmask 1043456   ;;  %v1123_v12 = vmov 0.0|0.0   ;;  %v597_v48 = vlaneseq }
  0x32   : > { %950 = vmatprep.subr.bf16.mxu0 %v1043_v0  ;;  %v1045_v2 = vld [vmem:[%s1346_s1 + $0x10] sm:$0xff]   ;;  %v1048_v3 = vld [vmem:[%s238_s19] sm:$0xff]   ;;  %v1046_v4 = vld [vmem:[%s1346_s1 + $0x18] sm:$0xff]   ;;  %992 = vmatprep.subr.bf16.mxu1 %v1123_v12  ;;  %vm1124_vm2 = vmmov 0   ;;  %v1125_v14 = vmov 0.0   ;;  %vm424_vm3 = vcmask 130048  }
  0x33   : > { %951 = vmatpush3.bf16.msra.mxu0 %v1043_v0  ;;  %960 = vmatprep.mubr.msk.bf16.mxu0 %vm337_vm0, %v1048_v3  ;;  %v1047_v5 = vld [vmem:[%s1346_s1 + $0x20] ss:$0 sps:$4 sm:$0xff]   ;;  %v1049_v7 = vld [vmem:[%s238_s19 + $0x8] sm:$0xff]   ;;  %v1050_v8 = vld [vmem:[%s238_s19 + $0x10] sm:$0xff]   ;;  %vm520_vm4 = vcmask 31744   ;;  %v598_v49 = vshrl.u32 %v597_v48, 7 }
  0x34   : > { %952 = vmatprep.subr.bf16.mxu0 %v1044_v1  ;;  %v352_v6 = vsel %vm350_vm1, %v1047_v5, 0  ;;  %v1051_v9 = vld [vmem:[%s238_s19 + $0x18] sm:$0xff]   ;;  %v419_v10 = vld [vmem:[%s1347_s2] sm:$0xff]  ;;  %v420_v11 = vld [vmem:[%s1347_s2 + $0x8] sm:$0xff]  ;;  %972 = vmatprep.mubr.msk.f32.mxu1 %vm1124_vm2, %v1125_v14  ;;  %p267_p7 = scmp.lt.s32.totalorder %s1180_s25, 1 }
  0x35   : > { %v993_v13 = vpack.c.bf16 %v420_v11, %v419_v10  ;;  %v421_v44 = vld [vmem:[%s1348_s3] sm:$0xf]  ;;  %v599_v50 = vsub.s32 0, %v598_v49 }
  0x36   : > { %s1360_s25 = smov (!%p267_p7, %s1180_s25), 1 }
  0x37   : > { %953 = vmatpush3.bf16.msra.mxu0 %v1044_v1  ;;  %994 = vmatpush3.bf16.msra.mxu1 %v993_v13  ;;  %s930_s21 = sshll.u32 %s1360_s25, 6 }
  0x38   : > { %954 = vmatprep.subr.bf16.mxu0 %v1045_v2  ;;  %975 = vmatprep.subr.mxu1 %v1125_v14  ;;  %s271_s24 = scalar_lea.vmem %s1351_s6, %s930_s21 }
  0x3b   : > { %955 = vmatpush3.bf16.msra.mxu0 %v1045_v2 }
  0x3c   : > { %956 = vmatprep.subr.bf16.mxu0 %v1046_v4 }
  0x3f   : > { %957 = vmatpush3.bf16.msra.mxu0 %v1046_v4 }
  0x40   : > { %998 = vmatprep.subr.msk.bf16.mxu0 %vm350_vm1, %v1047_v5 }
  0x43   : > { %959 = vmatpush3.bf16.msra.mxu0 %v352_v6 }
  0x46   : > { %961 = vmatmul.mubr.msk.bf16.vlgmr.msra.gmra.mrb[0].mxu0 %vm337_vm0, %v1049_v7 }
  0x47   : > { %964 = vmatprep.mubr.msk.bf16.mxu0 %vm337_vm0, %v1050_v8 }
  0x4e   : > { %965 = vmatmul.mubr.msk.bf16.gmra.mrb[4].mxu0 %vm337_vm0, %v1051_v9 }
 0x119   : > { %v962_v15 = vpop.f32.mrb[0].mxu0 }
 0x11a   : > { %v388_v16 = vpop.f32.mrb[1].mxu0  ;;  %v428_v22 = vsel %vm424_vm3, %v962_v15, 0.0 }
 0x11b   : > { %v963_v17 = vpop.f32.mrb[2].mxu0  ;;  %v425_v19 = vsel %vm424_vm3, %v388_v16, 0.0 }
 0x11c   : > { %v391_v18 = vpop.f32.mrb[3].mxu0  ;;  %v430_v24 = vsel %vm424_vm3, %v963_v17, 0.0 }
 0x11d   : > { %v426_v20 = vsel %vm424_vm3, %v391_v18, 0.0 }
 0x11e   : > { %v427_v21 = vadd.f32 %v426_v20, %v425_v19 }
 0x120   : > { %v429_v23 = vadd.f32 %v428_v22, %v427_v21 }
 0x121   : > { %v966_v25 = vpop.f32.mrb[4].mxu0 }
 0x122   : > { %v404_v26 = vpop.f32.mrb[5].mxu0  ;;  %v431_v27 = vadd.f32 %v430_v24, %v429_v23  ;;  %v436_v34 = vsel %vm424_vm3, %v966_v25, 0.0 }
 0x123   : > { %v432_v28 = vsel %vm424_vm3, %v404_v26, 0.0  ;;  %v967_v29 = vpop.f32.mrb[6].mxu0 }
 0x124   : > { %v433_v30 = vadd.f32 %v432_v28, %v431_v27  ;;  %v407_v31 = vpop.f32.mrb[7].mxu0  ;;  %v438_v36 = vsel %vm424_vm3, %v967_v29, 0.0 }
 0x125   : > { %v434_v32 = vsel %vm424_vm3, %v407_v31, 0.0 }
 0x126   : > { %v435_v33 = vadd.f32 %v434_v32, %v433_v30 }
 0x128   : > { %v437_v35 = vadd.f32 %v436_v34, %v435_v33  ;;  %v422_v33 = vld [vmem:[%s1349_s4] sm:$0x1] }
 0x12a   : > { %v439_v37 = vadd.f32 %v438_v36, %v437_v35 }
 0x12c   : > { %v440_v38 = vrot.slane %v439_v37, 4 }
 0x12e   : > { %v441_v39 = vadd.f32 %v440_v38, %v439_v37 }
 0x130   : > { %v442_v40 = vrot.slane %v441_v39, 2 }
 0x132   : > { %v443_v41 = vadd.f32 %v442_v40, %v441_v39 }
 0x134   : > { %v444_v42 = vrot.slane %v443_v41, 1 }
 0x136   : > { %v445_v43 = vadd.f32 %v444_v42, %v443_v41 }
 0x138   : > { %973 = vmatmul.mubr.msk.f32.vlgmr.msra.gmra.mrb[0].mxu1 %vm424_vm3, %v445_v43 }
 0x139   : > { %976 = vmatpush3.msk.msra.mxu1 %vm350_vm1, %v421_v44  ;;  %977 = vmatprep.mubr.msk.f32.mxu1 %vm1124_vm2, %v1125_v14 }
 0x13a   : > { %995 = vmatprep.subr.bf16.mxu1 %v1123_v12 }
 0x20b   : > { %v515_v45 = vpop.f32.mrb[0].mxu1 }
 0x20c   : > { %v519_v46 = vmul.f32 0.00390625, %v515_v45  ;;  %v974_v47 = vpop.f32.mrb[1].mxu1 }
 0x20e   : > { %978 = vmatmul.mubr.msk.f32.vlgmr.msra.gmra.mrb[2].mxu1 %vm520_vm4, %v519_v46 }
 0x20f   : > { %997 = vmatpush3.bf16.msra.mxu1 %v993_v13  ;;  %984 = vmatprep.mubr.msk.f32.mxu1 %vm1124_vm2, %v1125_v14 }
 0x210   : > { %987 = vmatprep.subr.mxu1 %v1125_v14 }
 0x2e1   : > { %v593_v51 = vpop.f32.mrb[2].mxu1 }
 0x2e2   : > { %v600_v52 = vrot.slane %v593_v51, %v599_v50  ;;  %v979_v53 = vpop.f32.mrb[3].mxu1 }
 0x2e4   : > { %v601_v54 = vsub.f32 %v388_v16, %v600_v52  ;;  %v602_v55 = vsub.f32 %v391_v18, %v600_v52  ;;  %v603_v56 = vsub.f32 %v962_v15, %v600_v52  ;;  %v604_v57 = vsub.f32 %v963_v17, %v600_v52 }
 0x2e5   : > { %v605_v58 = vsub.f32 %v404_v26, %v600_v52  ;;  %v606_v59 = vsub.f32 %v407_v31, %v600_v52  ;;  %v607_v60 = vsub.f32 %v966_v25, %v600_v52  ;;  %v608_v61 = vsub.f32 %v967_v29, %v600_v52 }
 0x2e6   : > { %v609_v62 = vmul.f32 %v601_v54, %v601_v54  ;;  %v610_v63 = vmul.f32 %v602_v55, %v602_v55  ;;  %v611_v0 = vmul.f32 %v603_v56, %v603_v56  ;;  %v612_v1 = vmul.f32 %v604_v57, %v604_v57 }
 0x2e7   : > { %v613_v5 = vmul.f32 %v605_v58, %v605_v58  ;;  %v614_v8 = vmul.f32 %v606_v59, %v606_v59  ;;  %v615_v11 = vmul.f32 %v607_v60, %v607_v60  ;;  %v616_v15 = vmul.f32 %v608_v61, %v608_v61 }
 0x2e8   : > { %v617_v2 = vsel %vm424_vm3, %v609_v62, 0.0  ;;  %v618_v3 = vsel %vm424_vm3, %v610_v63, 0.0  ;;  %v620_v6 = vsel %vm424_vm3, %v611_v0, 0.0  ;;  %v622_v9 = vsel %vm424_vm3, %v612_v1, 0.0 }
 0x2e9   : > { %v619_v4 = vadd.f32 %v618_v3, %v617_v2  ;;  %v624_v12 = vsel %vm424_vm3, %v613_v5, 0.0  ;;  %v626_v16 = vsel %vm424_vm3, %v614_v8, 0.0  ;;  %v628_v18 = vsel %vm424_vm3, %v615_v11, 0.0 }
 0x2ea   : > { %v630_v20 = vsel %vm424_vm3, %v616_v15, 0.0 }
 0x2eb   : > { %v621_v7 = vadd.f32 %v620_v6, %v619_v4 }
 0x2ed   : > { %v623_v10 = vadd.f32 %v622_v9, %v621_v7 }
 0x2ef   : > { %v625_v13 = vadd.f32 %v624_v12, %v623_v10 }
 0x2f1   : > { %v627_v17 = vadd.f32 %v626_v16, %v625_v13 }
 0x2f3   : > { %v629_v19 = vadd.f32 %v628_v18, %v627_v17 }
 0x2f5   : > { %v631_v21 = vadd.f32 %v630_v20, %v629_v19 }
 0x2f7   : > { %v632_v22 = vrot.slane %v631_v21, 4 }
 0x2f9   : > { %v633_v23 = vadd.f32 %v632_v22, %v631_v21 }
 0x2fb   : > { %v634_v24 = vrot.slane %v633_v23, 2 }
 0x2fd   : > { %v635_v25 = vadd.f32 %v634_v24, %v633_v23 }
 0x2ff   : > { %v636_v26 = vrot.slane %v635_v25, 1 }
 0x301   : > { %v637_v27 = vadd.f32 %v636_v26, %v635_v25 }
 0x303   : > { %985 = vmatmul.mubr.msk.f32.vlgmr.msra.gmra.mrb[4].mxu1 %vm424_vm3, %v637_v27 }
 0x304   : > { %988 = vmatpush3.msk.msra.mxu1 %vm350_vm1, %v421_v44  ;;  %989 = vmatprep.mubr.msk.f32.mxu1 %vm1124_vm2, %v1125_v14  ;;  %v926_v14 = vld [vmem:[%s1350_s5] ss:$0 sm:$0xff] }
 0x3d6   : > { %v707_v28 = vpop.f32.mrb[4].mxu1 }
 0x3d7   : > { %v711_v29 = vmul.f32 0.00390625, %v707_v28  ;;  %v986_v30 = vpop.f32.mrb[5].mxu1 }
 0x3d9   : > { %v712_v31 = vadd.f32 1e-05, %v711_v29 }
 0x3db   : > { %1052 = vrsqrt.f32 %v712_v31 }
 0x3e5   : > { %v1053_v32 = vpop.eup %1052 }
 0x3e6   : > { %990 = vmatmul.mubr.msk.f32.vlgmr.msra.gmra.mrb[6].mxu1 %vm520_vm4, %v1053_v32 }
 0x4b9   : > { %v783_v34 = vpop.f32.mrb[6].mxu1 }
 0x4ba   : > { %v787_v35 = vmul.f32 %v783_v34, %v422_v33  ;;  %v991_v36 = vpop.f32.mrb[7].mxu1 }
 0x4bc   : > { %v791_v37 = vrot.slane %v787_v35, %v599_v50 }
 0x4be   : > { %v792_v38 = vmul.f32 %v791_v37, %v601_v54  ;;  %v793_v39 = vmul.f32 %v791_v37, %v602_v55  ;;  %v794_v40 = vmul.f32 %v791_v37, %v603_v56  ;;  %v795_v41 = vmul.f32 %v791_v37, %v604_v57 }
 0x4bf   : > { %v796_v42 = vmul.f32 %v791_v37, %v605_v58  ;;  %v797_v43 = vmul.f32 %v791_v37, %v606_v59  ;;  %v798_v44 = vmul.f32 %v791_v37, %v607_v60  ;;  %v799_v45 = vmul.f32 %v791_v37, %v608_v61 }
 0x4c0   : > { %v806_v46 = vadd.f32 %v926_v14, %v792_v38  ;;  %v807_v47 = vadd.f32 %v926_v14, %v793_v39  ;;  %v808_v48 = vadd.f32 %v926_v14, %v794_v40  ;;  %v809_v49 = vadd.f32 %v926_v14, %v795_v41 }
 0x4c1   : > { %v810_v50 = vadd.f32 %v926_v14, %v796_v42  ;;  %v811_v51 = vadd.f32 %v926_v14, %v797_v43  ;;  %v812_v52 = vadd.f32 %v926_v14, %v798_v44  ;;  %v813_v53 = vadd.f32 %v926_v14, %v799_v45 }
 0x4c2   : > { %v814_v54 = vmax.f32 %v806_v46, 0.0  ;;  %v815_v55 = vmax.f32 %v807_v47, 0.0  ;;  %v816_v56 = vmax.f32 %v808_v48, 0.0  ;;  %v817_v57 = vmax.f32 %v809_v49, 0.0 }
 0x4c3   : > { %v818_v58 = vmax.f32 %v810_v50, 0.0  ;;  %v819_v59 = vmax.f32 %v811_v51, 0.0  ;;  %v820_v60 = vmax.f32 %v812_v52, 0.0  ;;  %v821_v61 = vmax.f32 %v813_v53, 0.0 }
 0x4c4   : > { %822 = vst.msk [vmem:[%s271_s24] sm:$0xff] %vm424_vm3, %v814_v54  ;;  %823 = vst.msk [vmem:[%s271_s24 + $0x8] sm:$0xff] %vm424_vm3, %v815_v55 }
 0x4c5   : > { %824 = vst.msk [vmem:[%s271_s24 + $0x10] sm:$0xff] %vm424_vm3, %v816_v56  ;;  %825 = vst.msk [vmem:[%s271_s24 + $0x18] sm:$0xff] %vm424_vm3, %v817_v57 }
 0x4c6   : > { %826 = vst.msk [vmem:[%s271_s24 + $0x20] sm:$0xff] %vm424_vm3, %v818_v58  ;;  %827 = vst.msk [vmem:[%s271_s24 + $0x28] sm:$0xff] %vm424_vm3, %v819_v59 }
 0x4c7   : > { %828 = vst.msk [vmem:[%s271_s24 + $0x30] sm:$0xff] %vm424_vm3, %v820_v60  ;;  %829 = vst.msk [vmem:[%s271_s24 + $0x38] sm:$0xff] %vm424_vm3, %v821_v61 }
 0x4c8 PF: > { %p16_p8 = scmp.ge.s32.totalorder %s1183_s26, 4   ;;  %s1355_s21 = smov %s1110_s22 }
 0x4c9   : > { %s1356_s22 = smov %s1114_s23  ;;  %s1357_s23 = smov %s1193_s29 }
 0x4ca   : > { %s1358_s24 = smov %s1183_s26  ;;  %18 = sbr.rel (!%p16_p8) target bundleno = 3 (0x3), region = 84 }
 0x4d1   :  { %851 = vsyncpa [#allocation3], 1 }
 0x4d2   :  { %853 = vsyncpa [#allocation3 + $0x1], 1 }

</bundles_post_ra>
